<compile_context>
chip_gen: v6e
topology: v6e:2x2x1
jax: 0.10.0
libtpu: 0.0.40
codegen_flags: <defaults>
</compile_context>

<pallas_src>
import functools

import jax
import jax.numpy as jnp
from jax.experimental import pallas as pl
from jax.experimental.pallas import tpu as pltpu


def _round_up(x, m):
    return ((x + m - 1) // m) * m


def _actor_kernel(x_ref, w1_ref, b1_ref, w2_ref, b2_ref, w3_ref, b3_ref,
                  o_ref, *, maxaction):
    """One batch tile per grid step; weights/biases are VMEM-resident."""
    # MXU matmuls run in the weights' dtype (f32 or bf16) with f32
    # accumulation; bias add / ReLU / tanh are f32.
    x = x_ref[...].astype(w1_ref.dtype)
    h1 = jnp.dot(x, w1_ref[...], preferred_element_type=jnp.float32) + b1_ref[...]
    h1 = jnp.maximum(h1, 0.0)                       # relu

    h2 = jnp.dot(h1.astype(w2_ref.dtype), w2_ref[...],
                 preferred_element_type=jnp.float32) + b2_ref[...]
    h2 = jnp.maximum(h2, 0.0)                       # relu

    h3 = jnp.dot(h2.astype(w3_ref.dtype), w3_ref[...],
                 preferred_element_type=jnp.float32) + b3_ref[...]
    o_ref[...] = (jnp.tanh(h3) * maxaction).astype(o_ref.dtype)  # tanh*maxaction


def _choose_tile(B, block_b, min_steps):
    """Batch tile: multiple of 8, <= block_b, aiming for >= min_steps grid
    steps (v7x megacore sharding + pipeline slack).  For tiny B the block
    equals the full batch dim (always layout-legal, single grid step)."""
    if B <= 8:
        return B
    tb = _round_up(pl.cdiv(B, min_steps), 8)
    tb = min(tb, _round_up(min(block_b, B), 8))
    return max(tb, 8)


def actor_forward(state, params, maxaction, *, block_b=2048, use_bf16=False,
                  min_steps=4):
    """state: (B, state_dim). params: dict of w1,b1,w2,b2,w3,b3.

    block_b: max batch tile (multiple of 8).  VMEM is not the constraint at
    these feature dims on any of v5e/v6e/v7x, so 1024-4096 is fine; the tile
    is also capped so the grid keeps >= min_steps steps for v7x's 2 TCs.
    use_bf16: stream bf16 state/weights into the kernel (halves dominant DMA
    bytes, ~3x fewer MXU passes on v5e); accumulation/bias/ReLU/tanh stay f32.
    Recommended default on v5e.  For zero wrapper-side casts, store the params
    (weights) and state in bf16 at the caller.
    """
    w1, b1 = params["w1"], params["b1"]
    w2, b2 = params["w2"], params["b2"]
    w3, b3 = params["w3"], params["b3"]

    if use_bf16:
        # Pre-cast OUTSIDE pallas_call so HBM->VMEM traffic is actually bf16.
        if w1.dtype != jnp.bfloat16:
            w1, w2, w3 = (w.astype(jnp.bfloat16) for w in (w1, w2, w3))
        if state.dtype != jnp.bfloat16:
            state = state.astype(jnp.bfloat16)

    B, state_dim = state.shape
    net_width = w1.shape[1]
    hidden2 = w2.shape[1]
    action_dim = w3.shape[1]

    # --- batch tiling (no padding, no output slice) ----------------------
    tb = _choose_tile(B, block_b, min_steps)
    grid = (pl.cdiv(B, tb),)  # ragged last block: garbage rows in, clipped out

    kernel = functools.partial(_actor_kernel, maxaction=float(maxaction))

    def _bytes(*arrs):
        return sum(int(a.size) * a.dtype.itemsize for a in arrs)

    cost = pl.CostEstimate(
        flops=2 * B * (state_dim * net_width
                       + net_width * hidden2
                       + hidden2 * action_dim),
        transcendentals=B * action_dim,  # tanh
        bytes_accessed=_bytes(state, w1, b1, w2, b2, w3, b3)
        + B * action_dim * 4,            # f32 output stream
    )

    # TODO(synk): hidden width 300 pads to 384 lanes and action_dim=4 forces
    # masked partial stores; if the model dims were negotiable, 128/256-wide
    # layers would remove the wasted lanes.  Kept as-is to match the module.
    return pl.pallas_call(
        kernel,
        out_shape=jax.ShapeDtypeStruct((B, action_dim), jnp.float32),
        grid=grid,
        in_specs=[
            # Batch-tiled state stream (double-buffered by the pipeline).
            pl.BlockSpec((tb, state_dim), lambda i: (i, 0)),
            # Weights / biases: full-array blocks, constant index_map ->
            # fetched once, VMEM-resident across all grid steps.
            pl.BlockSpec(w1.shape, lambda i: (0, 0)),
            pl.BlockSpec(b1.shape, lambda i: (0, 0)),
            pl.BlockSpec(w2.shape, lambda i: (0, 0)),
            pl.BlockSpec(b2.shape, lambda i: (0, 0)),
            pl.BlockSpec(w3.shape, lambda i: (0, 0)),
            pl.BlockSpec(b3.shape, lambda i: (0, 0)),
        ],
        out_specs=pl.BlockSpec((tb, action_dim), lambda i: (i, 0)),
        compiler_params=pltpu.CompilerParams(
            # Batch axis is embarrassingly parallel -> megacore sharding on v7x.
            dimension_semantics=("parallel",),
        ),
        cost_estimate=cost,
    )(state, w1, b1, w2, b2, w3, b3)


def init_actor_params(key, state_dim, action_dim, net_width):
    """Deterministic init mimicking PyTorch nn.Linear default
    (U[-1/sqrt(fan_in), 1/sqrt(fan_in)]).

    Weights are stored as (in_features, out_features) = PyTorch weight .T.
    """
    dims = [(state_dim, net_width), (net_width, 300), (300, action_dim)]
    params = {}
    for i, (fan_in, fan_out) in enumerate(dims, start=1):
        key, kw, kb = jax.random.split(key, 3)
        bound = 1.0 / jnp.sqrt(jnp.float32(fan_in))
        params[f"w{i}"] = jax.random.uniform(
            kw, (fan_in, fan_out), jnp.float32, minval=-bound, maxval=bound)
        params[f"b{i}"] = jax.random.uniform(
            kb, (1, fan_out), jnp.float32, minval=-bound, maxval=bound)
    return params


def actor_reference(state, params, maxaction):
    """Pure-JAX reference of the PyTorch forward for verification."""
    h1 = jnp.maximum(state @ params["w1"] + params["b1"], 0.0)
    h2 = jnp.maximum(h1 @ params["w2"] + params["b2"], 0.0)
    return jnp.tanh(h2 @ params["w3"] + params["b3"]) * maxaction


if __name__ == "__main__":
    # Small shapes consistent with the module's forward.
    state_dim = 16
    action_dim = 4
    net_width = 32
    maxaction = 2.0

    key = jax.random.PRNGKey(0)
    key, k_small, k_big = jax.random.split(key, 3)
    params = init_actor_params(key, state_dim, action_dim, net_width)

    # --- tiny batch (single grid step, block == full batch dim) ----------
    batch = 2
    state = jax.random.normal(k_small, (batch, state_dim), jnp.float32)
    out = jax.block_until_ready(actor_forward(state, params, maxaction))
    ref = actor_reference(state, params, maxaction)
    assert out.shape == (batch, action_dim)
    assert jnp.allclose(out, ref, atol=1e-5, rtol=1e-5), "f32 mismatch (tiny batch)"

    # --- larger, non-tile-multiple batch (multi-step grid, ragged last
    #     block handled by Pallas, no pad / no output slice) --------------
    big_batch = 1030
    state_big = jax.random.normal(k_big, (big_batch, state_dim), jnp.float32)
    out_big = jax.block_until_ready(
        actor_forward(state_big, params, maxaction))
    ref_big = actor_reference(state_big, params, maxaction)
    assert out_big.shape == (big_batch, action_dim)
    assert jnp.allclose(out_big, ref_big, atol=1e-4, rtol=1e-4), \
        "f32 mismatch (batch-tiled)"

    # --- bf16 streamed path (f32 accumulation), looser tolerance ---------
    out_bf16 = jax.block_until_ready(
        actor_forward(state_big, params, maxaction, use_bf16=True))
    assert out_bf16.shape == (big_batch, action_dim)
    assert jnp.allclose(out_bf16, ref_big, atol=5e-2, rtol=5e-2), \
        "bf16 mismatch vs f32 reference"

    print("KERNEL_OK")
</pallas_src>

<mosaic_0001>
module attributes {stable_mosaic.version = 11 : i64} {
  func.func @_actor_kernel(%arg0: i32, %arg1: memref<2x16xf32, #tpu.memory_space<vmem>>, %arg2: memref<16x32xf32, #tpu.memory_space<vmem>>, %arg3: memref<1x32xf32, #tpu.memory_space<vmem>>, %arg4: memref<32x300xf32, #tpu.memory_space<vmem>>, %arg5: memref<1x300xf32, #tpu.memory_space<vmem>>, %arg6: memref<300x4xf32, #tpu.memory_space<vmem>>, %arg7: memref<1x4xf32, #tpu.memory_space<vmem>>, %arg8: memref<2x4xf32, #tpu.memory_space<vmem>>) attributes {dimension_semantics = [#tpu.dimension_semantics<parallel>], iteration_bounds = array<i64: 1>, scalar_prefetch = 0 : i64, scratch_operands = 0 : i64, tpu.core_type = #tpu.core_type<tc>, window_params = [{transform_indices = @transform_0, window_bounds = array<i64: 2, 16>}, {pipeline_mode = #tpu.pipeline_mode<synchronous>, transform_indices = @transform_1, window_bounds = array<i64: 16, 32>}, {pipeline_mode = #tpu.pipeline_mode<synchronous>, transform_indices = @transform_2, window_bounds = array<i64: 1, 32>}, {pipeline_mode = #tpu.pipeline_mode<synchronous>, transform_indices = @transform_3, window_bounds = array<i64: 32, 300>}, {pipeline_mode = #tpu.pipeline_mode<synchronous>, transform_indices = @transform_4, window_bounds = array<i64: 1, 300>}, {pipeline_mode = #tpu.pipeline_mode<synchronous>, transform_indices = @transform_5, window_bounds = array<i64: 300, 4>}, {pipeline_mode = #tpu.pipeline_mode<synchronous>, transform_indices = @transform_6, window_bounds = array<i64: 1, 4>}, {transform_indices = @transform_7, window_bounds = array<i64: 2, 4>}]} {
    %c0 = arith.constant 0 : index
    %c0_0 = arith.constant 0 : index
    %0 = vector.load %arg1[%c0, %c0_0] : memref<2x16xf32, #tpu.memory_space<vmem>>, vector<2x16xf32>
    %c0_1 = arith.constant 0 : index
    %c0_2 = arith.constant 0 : index
    %1 = vector.load %arg2[%c0_1, %c0_2] : memref<16x32xf32, #tpu.memory_space<vmem>>, vector<16x32xf32>
    %cst = arith.constant dense<0.000000e+00> : vector<2x32xf32>
    %2 = tpu.matmul %0, %1, %cst {dimension_numbers = #tpu.dot_dimension_numbers<[1], [0], [0], [1], [0, 0, 1, 1], [], []>} : vector<2x16xf32>, vector<16x32xf32>, vector<2x32xf32> -> vector<2x32xf32>
    %c0_3 = arith.constant 0 : index
    %c0_4 = arith.constant 0 : index
    %3 = vector.load %arg3[%c0_3, %c0_4] : memref<1x32xf32, #tpu.memory_space<vmem>>, vector<1x32xf32>
    %4 = vector.broadcast %3 : vector<1x32xf32> to vector<2x32xf32>
    %5 = arith.addf %2, %4 : vector<2x32xf32>
    %cst_5 = arith.constant 0.000000e+00 : f32
    %6 = vector.broadcast %cst_5 : f32 to vector<2x32xf32>
    %7 = arith.maximumf %5, %6 : vector<2x32xf32>
    %c0_6 = arith.constant 0 : index
    %c0_7 = arith.constant 0 : index
    %8 = vector.load %arg4[%c0_6, %c0_7] : memref<32x300xf32, #tpu.memory_space<vmem>>, vector<32x300xf32>
    %cst_8 = arith.constant dense<0.000000e+00> : vector<2x300xf32>
    %9 = tpu.matmul %7, %8, %cst_8 {dimension_numbers = #tpu.dot_dimension_numbers<[1], [0], [0], [1], [0, 0, 1, 1], [], []>} : vector<2x32xf32>, vector<32x300xf32>, vector<2x300xf32> -> vector<2x300xf32>
    %c0_9 = arith.constant 0 : index
    %c0_10 = arith.constant 0 : index
    %10 = vector.load %arg5[%c0_9, %c0_10] : memref<1x300xf32, #tpu.memory_space<vmem>>, vector<1x300xf32>
    %11 = vector.broadcast %10 : vector<1x300xf32> to vector<2x300xf32>
    %12 = arith.addf %9, %11 : vector<2x300xf32>
    %cst_11 = arith.constant 0.000000e+00 : f32
    %13 = vector.broadcast %cst_11 : f32 to vector<2x300xf32>
    %14 = arith.maximumf %12, %13 : vector<2x300xf32>
    %c0_12 = arith.constant 0 : index
    %c0_13 = arith.constant 0 : index
    %15 = vector.load %arg6[%c0_12, %c0_13] : memref<300x4xf32, #tpu.memory_space<vmem>>, vector<300x4xf32>
    %cst_14 = arith.constant dense<0.000000e+00> : vector<2x4xf32>
    %16 = tpu.matmul %14, %15, %cst_14 {dimension_numbers = #tpu.dot_dimension_numbers<[1], [0], [0], [1], [0, 0, 1, 1], [], []>} : vector<2x300xf32>, vector<300x4xf32>, vector<2x4xf32> -> vector<2x4xf32>
    %c0_15 = arith.constant 0 : index
    %c0_16 = arith.constant 0 : index
    %17 = vector.load %arg7[%c0_15, %c0_16] : memref<1x4xf32, #tpu.memory_space<vmem>>, vector<1x4xf32>
    %18 = vector.broadcast %17 : vector<1x4xf32> to vector<2x4xf32>
    %19 = arith.addf %16, %18 : vector<2x4xf32>
    %20 = math.tanh %19 : vector<2x4xf32>
    %cst_17 = arith.constant 2.000000e+00 : f32
    %21 = vector.broadcast %cst_17 : f32 to vector<2x4xf32>
    %22 = arith.mulf %20, %21 : vector<2x4xf32>
    %c0_18 = arith.constant 0 : index
    %c0_19 = arith.constant 0 : index
    %23 = vector.load %arg8[%c0_18, %c0_19] : memref<2x4xf32, #tpu.memory_space<vmem>>, vector<2x4xf32>
    tpu.vector_store %arg8[%c0_18, %c0_19], %22 {strides = array<i32>} : memref<2x4xf32, #tpu.memory_space<vmem>>, vector<2x4xf32>,
    return
  }
  func.func @transform_0(%arg0: i32) -> (i32, i32) {
    %c0_i32 = arith.constant 0 : i32
    %c0_i32_0 = arith.constant 0 : i32
    return %arg0, %c0_i32 : i32, i32
  }
  func.func @transform_1(%arg0: i32) -> (i32, i32) {
    %c0_i32 = arith.constant 0 : i32
    %c0_i32_0 = arith.constant 0 : i32
    %c0_i32_1 = arith.constant 0 : i32
    return %c0_i32, %c0_i32_0 : i32, i32
  }
  func.func @transform_2(%arg0: i32) -> (i32, i32) {
    %c0_i32 = arith.constant 0 : i32
    %c0_i32_0 = arith.constant 0 : i32
    %c0_i32_1 = arith.constant 0 : i32
    return %c0_i32, %c0_i32_0 : i32, i32
  }
  func.func @transform_3(%arg0: i32) -> (i32, i32) {
    %c0_i32 = arith.constant 0 : i32
    %c0_i32_0 = arith.constant 0 : i32
    %c0_i32_1 = arith.constant 0 : i32
    return %c0_i32, %c0_i32_0 : i32, i32
  }
  func.func @transform_4(%arg0: i32) -> (i32, i32) {
    %c0_i32 = arith.constant 0 : i32
    %c0_i32_0 = arith.constant 0 : i32
    %c0_i32_1 = arith.constant 0 : i32
    return %c0_i32, %c0_i32_0 : i32, i32
  }
  func.func @transform_5(%arg0: i32) -> (i32, i32) {
    %c0_i32 = arith.constant 0 : i32
    %c0_i32_0 = arith.constant 0 : i32
    %c0_i32_1 = arith.constant 0 : i32
    return %c0_i32, %c0_i32_0 : i32, i32
  }
  func.func @transform_6(%arg0: i32) -> (i32, i32) {
    %c0_i32 = arith.constant 0 : i32
    %c0_i32_0 = arith.constant 0 : i32
    %c0_i32_1 = arith.constant 0 : i32
    return %c0_i32, %c0_i32_0 : i32, i32
  }
  func.func @transform_7(%arg0: i32) -> (i32, i32) {
    %c0_i32 = arith.constant 0 : i32
    %c0_i32_0 = arith.constant 0 : i32
    return %arg0, %c0_i32 : i32, i32
  }
}

</mosaic_0001>

<bundles_post_ra>
// kernel: tpu_custom_call.1
= control target key start
LH: loop header
LB: loop body
LE: loop exit
PB: predicated region body
PF: predicated region fallthrough
CT: control target
= control target key end

     0   :  { %v617_v1 = vmov 0.0   ;;  %vm618_vm0 = vmmov 0   ;;  %vm37_vm1 = vcmask 130048   ;;  %s850_s0 = inlined_call_operand.vmem [shape: f32[2,16], index: 0, kind: input, shape index: {}]   ;;  %s851_s1 = inlined_call_operand.vmem [shape: f32[16,32], index: 1, kind: input, shape index: {}]   ;;  %s852_s2 = inlined_call_operand.vmem [shape: f32[1,32], index: 2, kind: input, shape index: {}]   ;;  %s853_s3 = inlined_call_operand.vmem [shape: f32[32,300], index: 3, kind: input, shape index: {}]   ;;  %s854_s4 = inlined_call_operand.vmem [shape: f32[1,300], index: 4, kind: input, shape index: {}]   ;;  %s855_s5 = inlined_call_operand.vmem [shape: f32[300,4], index: 5, kind: input, shape index: {}]   ;;  %s856_s6 = inlined_call_operand.vmem [shape: f32[1,4], index: 6, kind: input, shape index: {}]   ;;  %s857_s7 = inlined_call_operand.hbm [shape: f32[2,4], index: 7, kind: output, shape index: {}]  }
   0x1   :  { %v29_v0 = vld [vmem:[%s851_s1 + $0x8] sm:$0xff]  ;;  %557 = vmatprep.subr.mxu0 %v617_v1  ;;  %v28_v2 = vld [vmem:[%s851_s1] sm:$0xff]  ;;  %561 = vmatprep.mubr.msk.f32.mxu0 %vm618_vm0, %v617_v1  ;;  %v122_v4 = vld [vmem:[%s853_s3 + $0x50] sm:$0xff] }
   0x2   :  { %558 = vmatpush3.msra.mxu0 %v29_v0  ;;  %v27_v3 = vld [vmem:[%s850_s0] sm:$0x3] }
   0x3   :  { %12 = vsyncpa [#allocation3], 0  ;;  %559 = vmatprep.subr.mxu0 %v617_v1  ;;  %v121_v5 = vld [vmem:[%s853_s3 + $0x48] sm:$0xff]  ;;  %v119_v6 = vld [vmem:[%s853_s3 + $0x38] sm:$0xff]  ;;  %vm141_vm2 = vcmask 261120   ;;  %vm338_vm3 = vcmask 1043456   ;;  %v126_v59 = vlaneseq }
   0x4   :  { %560 = vmatpush3.msra.mxu0 %v28_v2  ;;  %v118_v7 = vld [vmem:[%s853_s3 + $0x30] sm:$0xff]  ;;  %v116_v8 = vld [vmem:[%s853_s3 + $0x20] sm:$0xff]  ;;  %v115_v9 = vld [vmem:[%s853_s3 + $0x18] sm:$0xff]  ;;  %vm334_vm4 = vcmask 359424   ;;  %s619_s8 = smov [#allocation2]   ;;  %vm484_vm5 = vcmask 25600  }
   0x5   :  { %562 = vmatmul.mubr.msk.f32.vlgmr.msra.gmra.mxu0 %vm37_vm1, %v27_v3  ;;  %169 = vmatprep.subr.mxu0 %v122_v4  ;;  %v113_v10 = vld [vmem:[%s853_s3 + $0x8] sm:$0xff]  ;;  %v112_v11 = vld [vmem:[%s853_s3] sm:$0xff]  ;;  %v320_v12 = vld [vmem:[%s855_s5 + $0xf8] sm:$0xff]  ;;  %v127_v60 = vshrl.u32 %v126_v59, 7 }
   0x6   :  { %170 = vmatpush1.msra.mxu0 %v121_v5  ;;  %209 = vmatprep.mubr.f32.mxu0 %v617_v1  ;;  %v304_v13 = vld [vmem:[%s855_s5 + $0x78] sm:$0xff]  ;;  %v319_v14 = vld [vmem:[%s855_s5 + $0xf0] sm:$0xff]  ;;  %v318_v16 = vld [vmem:[%s855_s5 + $0xe8] sm:$0xff] }
   0x7   :  { %171 = vmatprep.subr.mxu0 %v119_v6  ;;  %515 = vmatprep.subr.mxu1 %v320_v12  ;;  %v303_v15 = vld [vmem:[%s855_s5 + $0x70] sm:$0xff]  ;;  %v302_v17 = vld [vmem:[%s855_s5 + $0x68] sm:$0xff]  ;;  %v317_v18 = vld [vmem:[%s855_s5 + $0xe0] sm:$0xff]  ;;  %v128_v61 = vsub.s32 0, %v127_v60  ;;  %v132_v63 = vsub.s32 1, %v127_v60  ;;  %v136_v4 = vsub.s32 2, %v127_v60 }
   0x8   :  { %172 = vmatpush1.msra.mxu0 %v118_v7  ;;  %516 = vmatpush3.msra.mxu1 %v304_v13  ;;  %v301_v19 = vld [vmem:[%s855_s5 + $0x60] sm:$0xff]  ;;  %v316_v20 = vld [vmem:[%s855_s5 + $0xd8] sm:$0xff]  ;;  %v315_v22 = vld [vmem:[%s855_s5 + $0xd0] sm:$0xff] }
   0x9   :  { %173 = vmatprep.subr.mxu0 %v116_v8  ;;  %517 = vmatprep.subr.mxu1 %v319_v14  ;;  %v300_v21 = vld [vmem:[%s855_s5 + $0x58] sm:$0xff]  ;;  %v299_v23 = vld [vmem:[%s855_s5 + $0x50] sm:$0xff]  ;;  %v314_v24 = vld [vmem:[%s855_s5 + $0xc8] sm:$0xff] }
   0xa   :  { %174 = vmatpush1.msra.mxu0 %v115_v9  ;;  %518 = vmatpush3.msra.mxu1 %v303_v15  ;;  %v298_v25 = vld [vmem:[%s855_s5 + $0x48] sm:$0xff]  ;;  %v313_v26 = vld [vmem:[%s855_s5 + $0xc0] sm:$0xff]  ;;  %v312_v28 = vld [vmem:[%s855_s5 + $0xb8] sm:$0xff] }
   0xb   :  { %175 = vmatprep.subr.mxu0 %v113_v10  ;;  %519 = vmatprep.subr.mxu1 %v318_v16  ;;  %v297_v27 = vld [vmem:[%s855_s5 + $0x40] sm:$0xff]  ;;  %v296_v29 = vld [vmem:[%s855_s5 + $0x38] sm:$0xff]  ;;  %v311_v30 = vld [vmem:[%s855_s5 + $0xb0] sm:$0xff] }
   0xc   :  { %176 = vmatpush1.msra.mxu0 %v112_v11  ;;  %520 = vmatpush3.msra.mxu1 %v302_v17  ;;  %v295_v31 = vld [vmem:[%s855_s5 + $0x30] sm:$0xff]  ;;  %v310_v32 = vld [vmem:[%s855_s5 + $0xa8] sm:$0xff]  ;;  %v309_v34 = vld [vmem:[%s855_s5 + $0xa0] sm:$0xff] }
   0xd   :  { %564 = vmatprep.subr.mxu0 %v617_v1  ;;  %521 = vmatprep.subr.mxu1 %v317_v18  ;;  %v294_v33 = vld [vmem:[%s855_s5 + $0x28] sm:$0xff]  ;;  %v293_v35 = vld [vmem:[%s855_s5 + $0x20] sm:$0xff]  ;;  %v123_v41 = vld [vmem:[%s853_s3 + $0x58] sm:$0xff] }
   0xe   :  { %522 = vmatpush3.msra.mxu1 %v301_v19  ;;  %v500_v36 = vld [vmem:[%s852_s2] ss:$0 sm:$0xff]  ;;  %v117_v43 = vld [vmem:[%s853_s3 + $0x28] sm:$0xff]  ;;  %v114_v44 = vld [vmem:[%s853_s3 + $0x10] sm:$0xff] }
   0xf   :  { %523 = vmatprep.subr.mxu1 %v316_v20  ;;  %v120_v42 = vld [vmem:[%s853_s3 + $0x40] sm:$0xff]  ;;  %v308_v45 = vld [vmem:[%s855_s5 + $0x98] sm:$0xff]  ;;  %v326_v47 = vld [vmem:[%s855_s5 + $0x128] sm:$0xf]  ;;  %s492_s3 = sshll.u32 %s619_s8, 4  ;;  %s493_s3 = int_to_ptr.vmem [resolvable:$true] %s492_s3 }
  0x10   :  { %524 = vmatpush3.msra.mxu1 %v300_v21  ;;  %v292_v46 = vld [vmem:[%s855_s5 + $0x18] sm:$0xff]  ;;  %v307_v48 = vld [vmem:[%s855_s5 + $0x90] sm:$0xff]  ;;  %v325_v50 = vld [vmem:[%s855_s5 + $0x120] sm:$0xff]  ;;  %s595_s9 = scalar_lea.vmem %s493_s3, 32  ;;  %p600_p1 = scmp.lt.s32.totalorder %s493_s3, %s493_s3 }
  0x11   :  { %525 = vmatprep.subr.mxu1 %v315_v22  ;;  %v291_v49 = vld [vmem:[%s855_s5 + $0x10] sm:$0xff]  ;;  %v306_v51 = vld [vmem:[%s855_s5 + $0x88] sm:$0xff]  ;;  %v324_v53 = vld [vmem:[%s855_s5 + $0x118] sm:$0xff]  ;;  %p596_p0 = scmp.ne.s32.totalorder %s493_s3, %s595_s9  ;;  %p601_p2 = scmp.lt.s32.totalorder %s595_s9, %s595_s9 }
  0x12   :  { %526 = vmatpush3.msra.mxu1 %v299_v23  ;;  %v290_v52 = vld [vmem:[%s855_s5 + $0x8] sm:$0xff]  ;;  %v305_v54 = vld [vmem:[%s855_s5 + $0x80] sm:$0xff]  ;;  %v323_v56 = vld [vmem:[%s855_s5 + $0x110] sm:$0xff] }
  0x13   :  { %527 = vmatprep.subr.mxu1 %v314_v24  ;;  %v289_v55 = vld [vmem:[%s855_s5] sm:$0xff]  ;;  %v322_v57 = vld [vmem:[%s855_s5 + $0x108] sm:$0xff]  ;;  %p602_p3 = por %p601_p2, %p600_p1 }
  0x14   :  { %528 = vmatpush3.msra.mxu1 %v298_v25  ;;  %v321_v58 = vld [vmem:[%s855_s5 + $0x100] sm:$0xff] }
  0x15   :  { %529 = vmatprep.subr.mxu1 %v313_v26  ;;  %v124_v62 = vld [vmem:[%s854_s4] sm:$0x7]  ;;  %p603_p4 = pnand %p602_p3, %p596_p0 }
  0x16   :  { %530 = vmatpush3.msra.mxu1 %v297_v27  ;;  %v129_v0 = vrot.slane %v124_v62, %v128_v61  ;;  %v133_v2 = vrot.slane %v124_v62, %v132_v63  ;;  %v137_v7 = vrot.slane %v124_v62, %v136_v4  ;;  %v504_v16 = vld [vmem:[%s856_s6] ss:$0 sm:$0xff] }
  0x17   :  { %531 = vmatprep.subr.mxu1 %v312_v28 }
  0x18   :  { %532 = vmatpush3.msra.mxu1 %v296_v29 }
  0x19   :  { %533 = vmatprep.subr.mxu1 %v311_v30 }
  0x1a   :  { %534 = vmatpush3.msra.mxu1 %v295_v31 }
  0x1b   :  { %535 = vmatprep.subr.mxu1 %v310_v32 }
  0x1c   :  { %536 = vmatpush3.msra.mxu1 %v294_v33 }
  0x1d   :  { %537 = vmatprep.subr.mxu1 %v309_v34 }
  0x1e   :  { %538 = vmatpush3.msra.mxu1 %v293_v35 }
  0x1f   :  { %539 = vmatprep.subr.mxu1 %v308_v45 }
  0x20   :  { %540 = vmatpush3.msra.mxu1 %v292_v46 }
  0x21   :  { %541 = vmatprep.subr.mxu1 %v307_v48 }
  0x22   :  { %542 = vmatpush3.msra.mxu1 %v291_v49 }
  0x23   :  { %543 = vmatprep.subr.mxu1 %v306_v51 }
  0x24   :  { %544 = vmatpush3.msra.mxu1 %v290_v52 }
  0x25   :  { %545 = vmatprep.subr.mxu1 %v305_v54 }
  0x26   :  { %546 = vmatpush3.msra.mxu1 %v289_v55 }
  0xc5   :  { %v107_v37 = vpop.f32.mrf.mxu0 }
  0xc6   :  { %v108_v38 = vadd.f32 %v500_v36, %v107_v37 }
  0xc7   :  { %v563_v39 = vpop.f32.mrf.mxu0 }
  0xc8   :  { %v111_v40 = vmax.f32 %v108_v38, 0.0 }
  0xca   :  { %502 = vmatmul.mubr.msk.f32.vlgmr.msra.gmra.mxu0 %vm141_vm2, %v111_v40 }
  0xcb   :  { %565 = vmatpush3.msra.mxu0 %v123_v41  ;;  %572 = vmatprep.mubr.msk.f32.mxu0 %vm618_vm0, %v617_v1 }
  0xcc   :  { %566 = vmatprep.subr.mxu0 %v617_v1 }
  0xcd   :  { %567 = vmatpush3.msra.mxu0 %v120_v42 }
  0xce   :  { %568 = vmatprep.subr.mxu0 %v617_v1 }
  0xcf   :  { %569 = vmatpush3.msra.mxu0 %v117_v43 }
  0xd0   :  { %570 = vmatprep.subr.mxu0 %v617_v1 }
  0xd1   :  { %571 = vmatpush3.msra.mxu0 %v114_v44 }
  0xd2   :  { %573 = vmatmul.mubr.msk.f32.vlgmr.msra.gmra.mxu0 %vm141_vm2, %v111_v40  ;;  %575 = vmatprep.subr.mxu0 %v617_v1 }
  0xd3   :  { %587 = vmatprep.mubr.msk.f32.mxu0 %vm618_vm0, %v617_v1  ;;  %576 = vmatpush3.msk.msra.mxu0 %vm338_vm3, %v326_v47 }
  0xd4   :  { %577 = vmatprep.subr.mxu0 %v617_v1 }
  0xd5   :  { %578 = vmatpush3.msra.mxu0 %v325_v50 }
  0xd6   :  { %579 = vmatprep.subr.mxu0 %v617_v1 }
  0xd7   :  { %580 = vmatpush3.msra.mxu0 %v324_v53 }
  0xd8   :  { %581 = vmatprep.subr.mxu0 %v617_v1 }
  0xd9   :  { %582 = vmatpush3.msra.mxu0 %v323_v56 }
  0xda   :  { %583 = vmatprep.subr.mxu0 %v617_v1 }
  0xdb   :  { %584 = vmatpush3.msra.mxu0 %v322_v57 }
  0xdc   :  { %585 = vmatprep.subr.mxu0 %v617_v1 }
  0xdd   :  { %586 = vmatpush3.msra.mxu0 %v321_v58 }
 0x18a   :  { %v211_v3 = vpop.f32.mrf.mxu0 }
 0x18b   :  { %v212_v5 = vadd.f32 %v211_v3, %v129_v0 }
 0x18c   :  { %v213_v6 = vpop.f32.mrf.mxu0 }
 0x18d   :  { %v214_v1 = vadd.f32 %v213_v6, %v133_v2  ;;  %v286_v9 = vmax.f32 %v212_v5, 0.0 }
 0x18f   :  { %v287_v8 = vmax.f32 %v214_v1, 0.0 }
 0x191   :  { %406 = vmatprep.mubr.f32.mxu1 %v287_v8 }
 0x192   :  { %v282_v10 = vpop.f32.mrf.mxu0  ;;  %407 = vmatmul.mubr.f32.vlgmr.msra.gmra.mxu1 %v286_v9 }
 0x193   :  { %v283_v11 = vadd.f32 %v282_v10, %v137_v7 }
 0x194   :  { %v574_v12 = vpop.f32.mrf.mxu0 }
 0x195   :  { %v288_v13 = vmax.f32 %v283_v11, 0.0 }
 0x197   :  { %588 = vmatmul.mubr.msk.f32.vlgmr.msra.gmra.mxu0 %vm334_vm4, %v288_v13 }
 0x252   :  { %v547_v14 = vpop.f32.mrf.mxu1 }
 0x254   :  { %v548_v15 = vpop.f32.mrf.mxu1 }
 0x255   :  { %v549_v17 = vadd.f32 %v548_v15, %v547_v14 }
 0x257   :  { %v409_v18 = vadd.f32 %v549_v17, %v504_v16  ;;  %v478_v19 = vpop.f32.mrf.mxu0 }
 0x259   :  { %v479_v20 = vadd.f32 %v478_v19, %v409_v18  ;;  %v589_v21 = vpop.f32.mrf.mxu0 }
 0x25b   :  { %593 = vtanh.f32 %v479_v20 }
 0x268   :  { %v594_v22 = vpop.eup %593 }
 0x269   :  { %v483_v23 = vmul.f32 2.0, %v594_v22 }
 0x26b   :  { %485 = vst.msk [vmem:[#allocation2] sm:$0x3] %vm484_vm5, %v483_v23 }
 0x26c   :  { %606 = shalt.err (!%p603_p4)
}
 0x26d   :  { %495 = dma.vmem_to_hbm [thread:$0]  %s493_s3, 32, %s857_s7, [#allocation3]  }
 0x26e   :  { %615 = dma.done.wait [#allocation3], 32  }
 0x26f   :  { %616 = vsyncadd [#allocation3], 4294967264 }
 0x270   :  { %499 = vsyncpa [#allocation3], 1 }

</bundles_post_ra>
